<compile_context>
chip_gen: v6e
topology: v6e:2x2x1
jax: 0.10.0
libtpu: 0.0.40
codegen_flags: <defaults>
</compile_context>

<pallas_src>
import jax
import jax.numpy as jnp
from jax.experimental import pallas as pl
from jax.experimental.pallas import tpu as pltpu

_TARGET_BLOCK_BYTES = 4 * 1024 * 1024     # ~4 MiB per block (per buffer)
_VMEM_LIMIT_BYTES = 48 * 1024 * 1024      # headroom for 2x(in+out) buffers


def _scale_kernel(s_ref, x_ref, o_ref):
    # s_ref: (1,) f32 in SMEM; x_ref/o_ref: the current VMEM tile.
    x = x_ref[...]
    s = s_ref[0]
    if x.dtype == s.dtype:
        o_ref[...] = x * s
    else:
        # TODO(synk): native low-precision multiply (cast s once to x.dtype)
        # would shave a couple of VALU casts per vreg on v6e/v7x; keep the
        # robust f32-accumulate path since this op is memory-bound anyway.
        o_ref[...] = (x.astype(jnp.float32) * s).astype(o_ref.dtype)


def _round_up(v, m):
    return -(-v // m) * m


def _pick_row_block(rows, lane, itemsize):
    """Rows per block: sublane-aligned, ~_TARGET_BLOCK_BYTES, and split >=2
    ways when the whole thing fits in one block (so both v7x TCs get work)."""
    align = max(8, 32 // itemsize)          # f32 -> 8, bf16 -> 16, int8 -> 32
    if rows <= 8:
        return rows                         # full-extent block (full-dims rule)
    max_rows = max(align,
                   (_TARGET_BLOCK_BYTES // (lane * itemsize)) // align * align)
    if rows <= max_rows:
        half = -(-rows // 2)
        return min(max_rows, _round_up(half, align))
    return max_rows


def scale_forward(x, scale):
    """Pallas implementation of tridet Scale.forward: x * scale."""
    dtype = x.dtype
    itemsize = jnp.dtype(dtype).itemsize
    n = x.size
    scale_arr = jnp.asarray(scale, jnp.float32).reshape(1)

    cost = pl.CostEstimate(flops=n, transcendentals=0,
                           bytes_accessed=2 * n * itemsize)

    # ---------- Fast path: tile the original array, zero wrapper copies ----------
    if (x.ndim >= 2 and x.shape[-1] % 128 == 0 and x.shape[-2] > 0
            and 8 * x.shape[-1] * itemsize <= _TARGET_BLOCK_BYTES):
        lead = x.shape[:-2]
        rows, lane = x.shape[-2], x.shape[-1]
        row_blk = _pick_row_block(rows, lane, itemsize)
        grid = tuple(lead) + (pl.cdiv(rows, row_blk),)
        block_shape = (1,) * len(lead) + (row_blk, lane)

        def index_map(*g):
            return g[:-1] + (g[-1], 0)

        return pl.pallas_call(
            _scale_kernel,
            out_shape=jax.ShapeDtypeStruct(x.shape, dtype),
            grid=grid,
            in_specs=[
                pl.BlockSpec(memory_space=pltpu.MemorySpace.SMEM),  # scale
                pl.BlockSpec(block_shape, index_map),               # x tile
            ],
            out_specs=pl.BlockSpec(block_shape, index_map),
            compiler_params=pltpu.CompilerParams(
                dimension_semantics=("parallel",) * len(grid),
                vmem_limit_bytes=_VMEM_LIMIT_BYTES),
            cost_estimate=cost,
        )(scale_arr, x)

    # ---------- Generic path: lane-dense (rows, lane) slab over flat(x) ----------
    if n % 128 == 0:
        lane = 512 if n % 512 == 0 else (256 if n % 256 == 0 else 128)
        pad = 0
        rows = n // lane
        x2d = x.reshape(rows, lane)
    else:
        lane = 512
        pad = (-n) % lane
        rows = (n + pad) // lane
        x2d = jnp.pad(x.reshape(-1), (0, pad)).reshape(rows, lane)

    row_blk = _pick_row_block(rows, lane, itemsize)
    grid = (pl.cdiv(rows, row_blk),)        # partial tail block is masked

    out2d = pl.pallas_call(
        _scale_kernel,
        out_shape=jax.ShapeDtypeStruct((rows, lane), dtype),
        grid=grid,
        in_specs=[
            pl.BlockSpec(memory_space=pltpu.MemorySpace.SMEM),      # scale
            pl.BlockSpec((row_blk, lane), lambda i: (i, 0)),        # x tile
        ],
        out_specs=pl.BlockSpec((row_blk, lane), lambda i: (i, 0)),
        compiler_params=pltpu.CompilerParams(
            dimension_semantics=("parallel",),
            vmem_limit_bytes=_VMEM_LIMIT_BYTES),
        cost_estimate=cost,
    )(scale_arr, x2d)

    if pad:
        return out2d.reshape(-1)[:n].reshape(x.shape)
    return out2d.reshape(x.shape)


if __name__ == "__main__":
    key = jax.random.PRNGKey(0)
    k1, k2, k3, k4 = jax.random.split(key, 4)
    scale = jnp.float32(1.7)                # learnable scalar (init_value analogue)

    # Module-consistent small input (generic path, single full-extent block).
    x = jax.random.normal(k1, (2, 4, 16, 16), jnp.float32)
    out = jax.block_until_ready(scale_forward(x, scale))
    ref = x * scale
    assert out.shape == ref.shape and out.dtype == ref.dtype
    assert jnp.allclose(out, ref, atol=1e-6, rtol=1e-6)

    # Fast path (no wrapper reshapes): last dim % 128 == 0, partial tail block,
    # grid split across both TensorCores on v7x.
    x2 = jax.random.normal(k2, (2, 72, 256), jnp.float32)
    out2 = jax.block_until_ready(scale_forward(x2, scale))
    assert jnp.allclose(out2, x2 * scale, atol=1e-6, rtol=1e-6)

    # Generic path with a non-multiple-of-128 element count (pad branch).
    x3 = jax.random.normal(k3, (3, 5, 7), jnp.float32)
    out3 = jax.block_until_ready(scale_forward(x3, scale))
    assert jnp.allclose(out3, x3 * scale, atol=1e-6, rtol=1e-6)

    # bf16 smoke test (loose tolerance covers f32-accumulate vs native rounding).
    x4 = jax.random.normal(k4, (2, 16, 128), jnp.float32).astype(jnp.bfloat16)
    out4 = jax.block_until_ready(scale_forward(x4, scale))
    ref4 = (x4.astype(jnp.float32) * scale).astype(jnp.bfloat16)
    assert out4.dtype == jnp.bfloat16
    assert jnp.allclose(out4.astype(jnp.float32), ref4.astype(jnp.float32),
                        atol=1e-2, rtol=1e-2)

    print("KERNEL_OK")
</pallas_src>

<mosaic_0001>
module attributes {stable_mosaic.version = 11 : i64} {
  func.func @_scale_kernel(%arg0: i32, %arg1: memref<1xf32, #tpu.memory_space<smem>>, %arg2: memref<4x512xf32, #tpu.memory_space<vmem>>, %arg3: memref<4x512xf32, #tpu.memory_space<vmem>>) attributes {dimension_semantics = [#tpu.dimension_semantics<parallel>], iteration_bounds = array<i64: 1>, scalar_prefetch = 0 : i64, scratch_operands = 0 : i64, tpu.core_type = #tpu.core_type<tc>, window_params = [{transform_indices = @transform_0, window_bounds = array<i64: 1>}, {transform_indices = @transform_1, window_bounds = array<i64: 4, 512>}, {transform_indices = @transform_2, window_bounds = array<i64: 4, 512>}]} {
    %c0 = arith.constant 0 : index
    %c0_0 = arith.constant 0 : index
    %0 = vector.load %arg2[%c0, %c0_0] : memref<4x512xf32, #tpu.memory_space<vmem>>, vector<4x512xf32>
    %c0_1 = arith.constant 0 : index
    %1 = memref.load %arg1[%c0_1] : memref<1xf32, #tpu.memory_space<smem>>
    %2 = vector.broadcast %1 : f32 to vector<4x512xf32>
    %3 = arith.mulf %0, %2 : vector<4x512xf32>
    %c0_2 = arith.constant 0 : index
    %c0_3 = arith.constant 0 : index
    %4 = vector.load %arg3[%c0_2, %c0_3] : memref<4x512xf32, #tpu.memory_space<vmem>>, vector<4x512xf32>
    tpu.vector_store %arg3[%c0_2, %c0_3], %3 {strides = array<i32>} : memref<4x512xf32, #tpu.memory_space<vmem>>, vector<4x512xf32>,
    return
  }
  func.func @transform_0(%arg0: i32) -> i32 {
    %c0_i32 = arith.constant 0 : i32
    %c0_i32_0 = arith.constant 0 : i32
    return %c0_i32 : i32
  }
  func.func @transform_1(%arg0: i32) -> (i32, i32) {
    %c0_i32 = arith.constant 0 : i32
    %c0_i32_0 = arith.constant 0 : i32
    return %arg0, %c0_i32 : i32, i32
  }
  func.func @transform_2(%arg0: i32) -> (i32, i32) {
    %c0_i32 = arith.constant 0 : i32
    %c0_i32_0 = arith.constant 0 : i32
    return %arg0, %c0_i32 : i32, i32
  }
}

</mosaic_0001>

<bundles_post_ra>
// kernel: tpu_custom_call.1
= control target key start
LH: loop header
LB: loop body
LE: loop exit
PB: predicated region body
PF: predicated region fallthrough
CT: control target
= control target key end

     0   :  { %8 = vsyncpa [#allocation4], 0  ;;  %s120_s0 = inlined_call_operand.<no memory space> [shape: f32[1], index: 0, kind: input, shape index: {}]   ;;  %s121_s1 = inlined_call_operand.hbm [shape: f32[4,512], index: 1, kind: input, shape index: {}]   ;;  %s122_s2 = inlined_call_operand.hbm [shape: f32[4,512], index: 2, kind: output, shape index: {}]  }
   0x1   :  { %9 = vsyncpa [#allocation5], 0  ;;  %s94_s9 = smov [#allocation3]  }
   0x2   :  { %s18_s10 = sshll.u32 %s94_s9, 4  ;;  %s19_s10 = int_to_ptr.vmem [resolvable:$true] %s18_s10 }
   0x3   :  { %s58_s11 = scalar_lea.vmem %s19_s10, 256  ;;  %p63_p1 = scmp.lt.s32.totalorder %s19_s10, %s19_s10 }
   0x4   :  { %p59_p0 = scmp.ne.s32.totalorder %s19_s10, %s58_s11  ;;  %p64_p2 = scmp.lt.s32.totalorder %s58_s11, %s58_s11 }
   0x6   :  { %p65_p3 = por %p64_p2, %p63_p1 }
   0x8   :  { %p66_p4 = pnand %p65_p3, %p59_p0 }
   0xa   :  { %69 = shalt.err (!%p66_p4)
}
   0xb   :  { %21 = dma.hbm_to_vmem [thread:$0]  %s121_s1, 256, %s19_s10, [#allocation4]  }
   0xc   :  { %90 = dma.done.wait [#allocation4], 256  }
   0xd   :  { %91 = vsyncadd [#allocation4], 4294967040  ;;  %v28_v0 = vstv %s120_s0  ;;  %s95_s16 = smov [#allocation6]   ;;  %v25_v1 = vld [vmem:[#allocation3] sm:$0xff]  ;;  %v26_v2 = vld [vmem:[#allocation3 + $0x8] sm:$0xff] }
   0xe   :  { %s39_s17 = sshll.u32 %s95_s16, 4  ;;  %v29_v3 = vmul.f32 %v28_v0, %v25_v1  ;;  %v30_v4 = vmul.f32 %v28_v0, %v26_v2  ;;  %s40_s17 = int_to_ptr.vmem [resolvable:$true] %s39_s17 }
   0xf   :  { %s70_s18 = scalar_lea.vmem %s40_s17, 256  ;;  %p75_p6 = scmp.lt.s32.totalorder %s40_s17, %s40_s17 }
  0x10   :  { %31 = vst [vmem:[#allocation6] sm:$0xff] %v29_v3  ;;  %32 = vst [vmem:[#allocation6 + $0x8] sm:$0xff] %v30_v4  ;;  %p71_p5 = scmp.ne.s32.totalorder %s40_s17, %s70_s18  ;;  %p76_p7 = scmp.lt.s32.totalorder %s70_s18, %s70_s18 }
  0x12   :  { %p77_p8 = por %p76_p7, %p75_p6 }
  0x14   :  { %p78_p9 = pnand %p77_p8, %p71_p5 }
  0x16   :  { %81 = shalt.err (!%p78_p9)
}
  0x17   :  { %42 = dma.vmem_to_hbm [thread:$0]  %s40_s17, 256, %s122_s2, [#allocation5]  }
  0x18   :  { %92 = dma.done.wait [#allocation5], 256  }
  0x19   :  { %93 = vsyncadd [#allocation5], 4294967040 }
  0x1a   :  { %46 = vsyncpa [#allocation4], 1 }
  0x1b   :  { %47 = vsyncpa [#allocation5], 1 }

</bundles_post_ra>
